<compile_context>
chip_gen: v5e
topology: v5e:2x2
jax: 0.10.0
libtpu: 0.0.40
codegen_flags: <defaults>
</compile_context>

<pallas_src>
import functools

import jax
import jax.numpy as jnp
from jax import lax
from jax.experimental import pallas as pl
from jax.experimental.pallas import tpu as pltpu

_BN_EPS = 1e-5


# ----------------------------------------------------------------------------
# Fused Pallas kernel (one grid step == B images, channels-major (C, B*HW) layout)
# ----------------------------------------------------------------------------
def _fused_block_kernel(*refs, H, W, B, planes, stride, shortcut, use_bf16):
    if stride > 1:
        (x_ref, wcat_ref, bcat_ref, mw_ref, b2_ref, w3_ref, b3_ref,
         sel_ref, o_ref) = refs
    else:
        (x_ref, wcat_ref, bcat_ref, mw_ref, b2_ref, w3_ref, b3_ref,
         o_ref) = refs
        sel_ref = None

    HW = H * W
    BHW = B * HW

    x = x_ref[0]                                            # (cin, B*HW) f32
    x_mm = x.astype(jnp.bfloat16) if use_bf16 else x

    # ---- expand 1x1 conv (+ conv shortcut, concatenated): one MXU matmul, lane dim B*HW
    cat = jnp.dot(wcat_ref[...], x_mm, preferred_element_type=jnp.float32)
    cat = cat + bcat_ref[...]                               # BN scale already folded into weights
    if shortcut == "conv":
        e = jnp.maximum(cat[:planes, :], 0.0)               # expanded activations (planes, B*HW)
        sc = cat[planes:, :]                                # conv shortcut (BN, no ReLU)
    else:
        e = jnp.maximum(cat, 0.0)
        sc = x if shortcut == "identity" else None

    # ---- depthwise 3x3 (stride 1) on the flat lane-dense map: 9 static lane rolls.
    # Boundary (and cross-image) contributions are zeroed because the per-tap mask is
    # pre-folded into mw on the host, so each tap is just mul+add on the VPU.
    acc = jnp.zeros((planes, BHW), jnp.float32)
    for kh in range(3):
        for kw in range(3):
            t = kh * 3 + kw
            off = (kh - 1) * W + (kw - 1)
            tap = e if off == 0 else jnp.roll(e, -off, axis=-1)
            acc = acc + tap * mw_ref[t]                     # mw[t]: (planes, B*HW), mask folded in
    d = jnp.maximum(acc + b2_ref[...], 0.0)                 # (planes, B*HW)
    d_mm = d.astype(jnp.bfloat16) if use_bf16 else d

    # ---- project 1x1 conv + residual (over full HW; one-hot selection commutes with
    # the elementwise bias/ReLU, so stride subsampling happens after this matmul)
    y = jnp.dot(w3_ref[...], d_mm, preferred_element_type=jnp.float32) + b3_ref[...]
    if sc is not None:
        y = y + sc

    if stride > 1:
        # Per-image strided-pixel selection AFTER projection (f32, tiny matmuls), then a
        # single lane-dense concatenated store.
        sel = sel_ref[...]
        parts = [jnp.dot(y[:, b * HW:(b + 1) * HW], sel,
                         preferred_element_type=jnp.float32) for b in range(B)]
        out = parts[0] if B == 1 else jnp.concatenate(parts, axis=-1)
        o_ref[0] = out.astype(o_ref.dtype)
    else:
        o_ref[0] = y.astype(o_ref.dtype)


# ----------------------------------------------------------------------------
# Host-side helpers
# ----------------------------------------------------------------------------
def _choose_block_b(N, planes, cin, cout, HW, vmem_budget=20 * 1024 * 1024):
    """Pick images-per-grid-step B: as large as fits VMEM, but keep >=2 grid steps
    when possible so both v7x TensorCores get work."""
    def est_bytes(B):
        bhw = B * HW
        xb = 2 * cin * bhw * 4                 # double-buffered input block
        ob = 2 * cout * bhw * 4                # double-buffered output block
        mw = 2 * 9 * planes * bhw * 4          # masked depthwise weights (grid-invariant)
        inter = 6 * (planes + cout) * bhw * 4  # in-kernel f32 intermediates (rough)
        return xb + ob + mw + inter

    divisors = [d for d in range(1, N + 1) if N % d == 0]
    fits = [d for d in divisors if est_bytes(d) <= vmem_budget] or [1]
    pref = [d for d in fits if N // d >= 2]
    return max(pref) if pref else max(fits)


def _masked_tap_weights(w2_taps, H, W, B):
    """(planes, 9) BN-folded depthwise weights -> (9, planes, B*HW) with the per-tap
    boundary mask (tiled over the B images sharing the lane axis) pre-folded in."""
    HW = H * W
    pos = jnp.arange(HW)
    hh, ww = pos // W, pos % W
    mws = []
    for kh in range(3):
        for kw in range(3):
            dh, dw = kh - 1, kw - 1
            ok = ((hh + dh >= 0) & (hh + dh < H) & (ww + dw >= 0) & (ww + dw < W))
            mask = jnp.tile(ok.astype(jnp.float32), B)                  # (B*HW,)
            mws.append(w2_taps[:, kh * 3 + kw][:, None] * mask[None, :])
    return jnp.stack(mws, axis=0)                                       # (9, planes, B*HW)


# ----------------------------------------------------------------------------
# Wrapper
# ----------------------------------------------------------------------------
def dq_mobilenetv2_block(x_nchw, p, stride, *, block_b=None, use_bf16=False):
    """Forward of DQMobileNetV2CifarBlock (NCHW in / NCHW out), one fused pallas_call."""
    N, cin, H, W = x_nchw.shape
    planes = p["w2_taps"].shape[0]
    cout = p["w3f"].shape[0]
    HW = H * W
    Ho = (H - 1) // stride + 1
    Wo = (W - 1) // stride + 1
    HWo = Ho * Wo

    if stride == 1:
        shortcut = "conv" if p["wscf"] is not None else "identity"
    else:
        shortcut = "none"

    B = _choose_block_b(N, planes, cin, cout, HW) if block_b is None else block_b
    assert N % B == 0, (N, B)
    G = N // B
    BHW = B * HW

    mm_dtype = jnp.bfloat16 if use_bf16 else jnp.float32
    if shortcut == "conv":
        wcat = jnp.concatenate([p["w1f"], p["wscf"]], axis=0)           # (planes+cout, cin)
        bcat = jnp.concatenate([p["b1"], p["bsc"]], axis=0)             # (planes+cout, 1)
    else:
        wcat, bcat = p["w1f"], p["b1"]
    mcat = wcat.shape[0]
    wcat = wcat.astype(mm_dtype)
    w3 = p["w3f"].astype(mm_dtype)

    # Depthwise per-tap weights with boundary masks pre-folded (lane-dense, grid-invariant).
    mw = _masked_tap_weights(p["w2_taps"], H, W, B)                     # (9, planes, B*HW)

    # Host restage: (N, cin, H, W) -> (G, cin, B*HW), channels-major over each B-image chunk.
    x_st = (x_nchw.reshape(G, B, cin, HW)
            .transpose(0, 2, 1, 3)
            .reshape(G, cin, BHW))

    args = [x_st, wcat, bcat, mw, p["b2"], w3, p["b3"]]
    in_specs = [
        pl.BlockSpec((1, cin, BHW), lambda g: (g, 0, 0)),
        pl.BlockSpec((mcat, cin), lambda g: (0, 0)),
        pl.BlockSpec((mcat, 1), lambda g: (0, 0)),
        pl.BlockSpec((9, planes, BHW), lambda g: (0, 0, 0)),
        pl.BlockSpec((planes, 1), lambda g: (0, 0)),
        pl.BlockSpec((cout, planes), lambda g: (0, 0)),
        pl.BlockSpec((cout, 1), lambda g: (0, 0)),
    ]
    if stride > 1:
        # 0/1 one-hot selection matrix picking strided output pixels (host-precomputed).
        q = jnp.arange(HWo)
        src = (q // Wo) * stride * W + (q % Wo) * stride
        sel = jnp.zeros((HW, HWo), jnp.float32).at[src, q].set(1.0)
        args.append(sel)
        in_specs.append(pl.BlockSpec((HW, HWo), lambda g: (0, 0)))

    kernel = functools.partial(_fused_block_kernel, H=H, W=W, B=B, planes=planes,
                               stride=stride, shortcut=shortcut, use_bf16=use_bf16)

    out = pl.pallas_call(
        kernel,
        out_shape=jax.ShapeDtypeStruct((G, cout, B * HWo), jnp.float32),
        grid=(G,),
        in_specs=in_specs,
        out_specs=pl.BlockSpec((1, cout, B * HWo), lambda g: (g, 0, 0)),
        compiler_params=pltpu.CompilerParams(
            dimension_semantics=("parallel",),
            vmem_limit_bytes=32 * 1024 * 1024,
        ),
    )(*args)

    # (G, cout, B*HWo) -> NCHW (tiny XLA permute outside the kernel).
    return (out.reshape(G, cout, B, HWo)
            .transpose(0, 2, 1, 3)
            .reshape(N, cout, Ho, Wo))


# ----------------------------------------------------------------------------
# Deterministic synthetic parameters + pure-JAX reference (for verification)
# ----------------------------------------------------------------------------
def _bn_params(key, c):
    k1, k2, k3, k4 = jax.random.split(key, 4)
    gamma = 1.0 + 0.1 * jax.random.normal(k1, (c,), jnp.float32)
    beta = 0.1 * jax.random.normal(k2, (c,), jnp.float32)
    mean = 0.1 * jax.random.normal(k3, (c,), jnp.float32)
    var = jax.random.uniform(k4, (c,), jnp.float32, 0.5, 1.5)
    return gamma, beta, mean, var


def _bn_fold(bn):
    g, b, m, v = bn
    scale = g * lax.rsqrt(v + _BN_EPS)
    return scale, b - m * scale


def init_params(key, in_planes, out_planes, expansion, stride):
    planes = expansion * in_planes
    ks = jax.random.split(key, 8)
    w1 = 0.2 * jax.random.normal(ks[0], (planes, in_planes, 1, 1), jnp.float32)
    w2 = 0.2 * jax.random.normal(ks[1], (planes, 1, 3, 3), jnp.float32)
    w3 = 0.2 * jax.random.normal(ks[2], (out_planes, planes, 1, 1), jnp.float32)
    bn1, bn2, bn3 = _bn_params(ks[3], planes), _bn_params(ks[4], planes), _bn_params(ks[5], out_planes)
    s1, b1 = _bn_fold(bn1)
    s2, b2 = _bn_fold(bn2)
    s3, b3 = _bn_fold(bn3)

    p = dict(w1_oihw=w1, w2_oihw=w2, w3_oihw=w3, bn1=bn1, bn2=bn2, bn3=bn3)
    # BN scales folded directly into the conv weights; kernel only adds the bias.
    p["w1f"] = w1[:, :, 0, 0] * s1[:, None]                  # (planes, cin)
    p["b1"] = b1[:, None]                                    # (planes, 1)
    p["w2_taps"] = w2[:, 0].reshape(planes, 9) * s2[:, None] # (planes, 9), tap = kh*3+kw
    p["b2"] = b2[:, None]                                    # (planes, 1)
    p["w3f"] = w3[:, :, 0, 0] * s3[:, None]                  # (cout, planes)
    p["b3"] = b3[:, None]                                    # (cout, 1)

    if stride == 1 and in_planes != out_planes:
        wsc = 0.2 * jax.random.normal(ks[6], (out_planes, in_planes, 1, 1), jnp.float32)
        bnsc = _bn_params(ks[7], out_planes)
        ssc, bsc = _bn_fold(bnsc)
        p["wsc_oihw"], p["bnsc"] = wsc, bnsc
        p["wscf"] = wsc[:, :, 0, 0] * ssc[:, None]           # (cout, cin)
        p["bsc"] = bsc[:, None]                              # (cout, 1)
    else:
        p["wsc_oihw"] = None
        p["wscf"] = None
    return p


def torch_reference(x, p, stride):
    """Pure-JAX (lax.conv) replica of the PyTorch forward, NCHW, eval-mode BN."""
    dn = ("NCHW", "OIHW", "NCHW")

    def bn(y, params):
        g, b, m, v = params
        sc = (g * lax.rsqrt(v + _BN_EPS))[None, :, None, None]
        return (y - m[None, :, None, None]) * sc + b[None, :, None, None]

    out = lax.conv_general_dilated(x, p["w1_oihw"], (1, 1), "VALID", dimension_numbers=dn)
    out = jax.nn.relu(bn(out, p["bn1"]))
    out = lax.conv_general_dilated(out, p["w2_oihw"], (stride, stride), ((1, 1), (1, 1)),
                                   dimension_numbers=dn,
                                   feature_group_count=p["w2_oihw"].shape[0])
    out = jax.nn.relu(bn(out, p["bn2"]))
    out = lax.conv_general_dilated(out, p["w3_oihw"], (1, 1), "VALID", dimension_numbers=dn)
    out = bn(out, p["bn3"])
    if stride == 1:
        if p["wsc_oihw"] is not None:
            sc = lax.conv_general_dilated(x, p["wsc_oihw"], (1, 1), "VALID", dimension_numbers=dn)
            sc = bn(sc, p["bnsc"])
        else:
            sc = x
        out = out + sc
    return out


if __name__ == "__main__":
    key = jax.random.PRNGKey(0)
    H, W = 16, 16
    configs = [
        # (N, in_planes, out_planes, expansion, stride, use_bf16, atol, rtol)
        (2, 4, 8, 6, 1, False, 5e-4, 5e-4),   # conv 1x1 shortcut (in != out), B=1, grid=2
        (2, 8, 8, 6, 1, False, 5e-4, 5e-4),   # identity shortcut (in == out)
        (2, 4, 8, 6, 2, False, 5e-4, 5e-4),   # stride 2, no shortcut
        (8, 4, 8, 6, 1, False, 5e-4, 5e-4),   # batched path: B=4 images per grid step
        (8, 4, 8, 6, 2, False, 5e-4, 5e-4),   # batched stride-2 (per-image sel after projection)
        (8, 8, 8, 6, 1, True, 6e-2, 2e-2),    # bf16 MXU operands (v6e/v7x), f32 accumulation
    ]
    for idx, (N, cin, cout, exp, stride, use_bf16, atol, rtol) in enumerate(configs):
        kx, kp = jax.random.split(jax.random.fold_in(key, idx))
        x = jax.random.normal(kx, (N, cin, H, W), jnp.float32)
        params = init_params(kp, cin, cout, exp, stride)
        out = jax.block_until_ready(
            dq_mobilenetv2_block(x, params, stride, use_bf16=use_bf16))
        ref = torch_reference(x, params, stride)
        assert out.shape == ref.shape, (out.shape, ref.shape)
        err = float(jnp.max(jnp.abs(out - ref)))
        assert jnp.allclose(out, ref, atol=atol, rtol=rtol), (idx, err)
    print("KERNEL_OK")
</pallas_src>

<mosaic_0001>
module attributes {stable_mosaic.version = 11 : i64} {
  func.func @_fused_block_kernel(%arg0: i32, %arg1: memref<1x4x256xf32, #tpu.memory_space<vmem>>, %arg2: memref<32x4xf32, #tpu.memory_space<vmem>>, %arg3: memref<32x1xf32, #tpu.memory_space<vmem>>, %arg4: memref<9x24x256xf32, #tpu.memory_space<vmem>>, %arg5: memref<24x1xf32, #tpu.memory_space<vmem>>, %arg6: memref<8x24xf32, #tpu.memory_space<vmem>>, %arg7: memref<8x1xf32, #tpu.memory_space<vmem>>, %arg8: memref<1x8x256xf32, #tpu.memory_space<vmem>>) attributes {dimension_semantics = [#tpu.dimension_semantics<parallel>], iteration_bounds = array<i64: 2>, scalar_prefetch = 0 : i64, scratch_operands = 0 : i64, tpu.core_type = #tpu.core_type<tc>, window_params = [{transform_indices = @transform_0, window_bounds = array<i64: 1, 4, 256>}, {pipeline_mode = #tpu.pipeline_mode<synchronous>, transform_indices = @transform_1, window_bounds = array<i64: 32, 4>}, {pipeline_mode = #tpu.pipeline_mode<synchronous>, transform_indices = @transform_2, window_bounds = array<i64: 32, 1>}, {pipeline_mode = #tpu.pipeline_mode<synchronous>, transform_indices = @transform_3, window_bounds = array<i64: 9, 24, 256>}, {pipeline_mode = #tpu.pipeline_mode<synchronous>, transform_indices = @transform_4, window_bounds = array<i64: 24, 1>}, {pipeline_mode = #tpu.pipeline_mode<synchronous>, transform_indices = @transform_5, window_bounds = array<i64: 8, 24>}, {pipeline_mode = #tpu.pipeline_mode<synchronous>, transform_indices = @transform_6, window_bounds = array<i64: 8, 1>}, {transform_indices = @transform_7, window_bounds = array<i64: 1, 8, 256>}]} {
    %c0 = arith.constant 0 : index
    %c0_0 = arith.constant 0 : index
    %c0_1 = arith.constant 0 : index
    %0 = vector.load %arg1[%c0, %c0_0, %c0_1] : memref<1x4x256xf32, #tpu.memory_space<vmem>>, vector<1x4x256xf32>
    %1 = vector.shape_cast %0 : vector<1x4x256xf32> to vector<4x256xf32>
    %c0_2 = arith.constant 0 : index
    %c0_3 = arith.constant 0 : index
    %2 = vector.load %arg2[%c0_2, %c0_3] : memref<32x4xf32, #tpu.memory_space<vmem>>, vector<32x4xf32>
    %cst = arith.constant dense<0.000000e+00> : vector<32x256xf32>
    %3 = tpu.matmul %2, %1, %cst {dimension_numbers = #tpu.dot_dimension_numbers<[1], [0], [0], [1], [0, 0, 1, 1], [], []>} : vector<32x4xf32>, vector<4x256xf32>, vector<32x256xf32> -> vector<32x256xf32>
    %c0_4 = arith.constant 0 : index
    %c0_5 = arith.constant 0 : index
    %4 = vector.load %arg3[%c0_4, %c0_5] : memref<32x1xf32, #tpu.memory_space<vmem>>, vector<32x1xf32>
    %5 = vector.broadcast %4 : vector<32x1xf32> to vector<32x256xf32>
    %6 = arith.addf %3, %5 : vector<32x256xf32>
    %7 = vector.extract_strided_slice %6 {offsets = [0, 0], sizes = [24, 256], strides = [1, 1]} : vector<32x256xf32> to vector<24x256xf32>
    %cst_6 = arith.constant 0.000000e+00 : f32
    %8 = vector.broadcast %cst_6 : f32 to vector<24x256xf32>
    %9 = arith.maximumf %7, %8 : vector<24x256xf32>
    %10 = vector.extract_strided_slice %6 {offsets = [24, 0], sizes = [8, 256], strides = [1, 1]} : vector<32x256xf32> to vector<8x256xf32>
    %cst_7 = arith.constant 0.000000e+00 : f32
    %11 = vector.broadcast %cst_7 : f32 to vector<24x256xf32>
    %12 = vector.extract_strided_slice %9 {offsets = [0, 239], sizes = [24, 17], strides = [1, 1]} : vector<24x256xf32> to vector<24x17xf32>
    %13 = vector.extract_strided_slice %9 {offsets = [0, 0], sizes = [24, 239], strides = [1, 1]} : vector<24x256xf32> to vector<24x239xf32>
    %14 = tpu.concatenate %12, %13 in 1 : vector<24x17xf32>, vector<24x239xf32> -> vector<24x256xf32>
    %c0_8 = arith.constant 0 : index
    %c0_9 = arith.constant 0 : index
    %c0_10 = arith.constant 0 : index
    %15 = vector.load %arg4[%c0_8, %c0_9, %c0_10] : memref<9x24x256xf32, #tpu.memory_space<vmem>>, vector<1x24x256xf32>
    %16 = vector.shape_cast %15 : vector<1x24x256xf32> to vector<24x256xf32>
    %17 = arith.mulf %14, %16 : vector<24x256xf32>
    %18 = arith.addf %11, %17 : vector<24x256xf32>
    %19 = vector.extract_strided_slice %9 {offsets = [0, 240], sizes = [24, 16], strides = [1, 1]} : vector<24x256xf32> to vector<24x16xf32>
    %20 = vector.extract_strided_slice %9 {offsets = [0, 0], sizes = [24, 240], strides = [1, 1]} : vector<24x256xf32> to vector<24x240xf32>
    %21 = tpu.concatenate %19, %20 in 1 : vector<24x16xf32>, vector<24x240xf32> -> vector<24x256xf32>
    %c1 = arith.constant 1 : index
    %c0_11 = arith.constant 0 : index
    %c0_12 = arith.constant 0 : index
    %22 = vector.load %arg4[%c1, %c0_11, %c0_12] : memref<9x24x256xf32, #tpu.memory_space<vmem>>, vector<1x24x256xf32>
    %23 = vector.shape_cast %22 : vector<1x24x256xf32> to vector<24x256xf32>
    %24 = arith.mulf %21, %23 : vector<24x256xf32>
    %25 = arith.addf %18, %24 : vector<24x256xf32>
    %26 = vector.extract_strided_slice %9 {offsets = [0, 241], sizes = [24, 15], strides = [1, 1]} : vector<24x256xf32> to vector<24x15xf32>
    %27 = vector.extract_strided_slice %9 {offsets = [0, 0], sizes = [24, 241], strides = [1, 1]} : vector<24x256xf32> to vector<24x241xf32>
    %28 = tpu.concatenate %26, %27 in 1 : vector<24x15xf32>, vector<24x241xf32> -> vector<24x256xf32>
    %c2 = arith.constant 2 : index
    %c0_13 = arith.constant 0 : index
    %c0_14 = arith.constant 0 : index
    %29 = vector.load %arg4[%c2, %c0_13, %c0_14] : memref<9x24x256xf32, #tpu.memory_space<vmem>>, vector<1x24x256xf32>
    %30 = vector.shape_cast %29 : vector<1x24x256xf32> to vector<24x256xf32>
    %31 = arith.mulf %28, %30 : vector<24x256xf32>
    %32 = arith.addf %25, %31 : vector<24x256xf32>
    %33 = vector.extract_strided_slice %9 {offsets = [0, 255], sizes = [24, 1], strides = [1, 1]} : vector<24x256xf32> to vector<24x1xf32>
    %34 = vector.extract_strided_slice %9 {offsets = [0, 0], sizes = [24, 255], strides = [1, 1]} : vector<24x256xf32> to vector<24x255xf32>
    %35 = tpu.concatenate %33, %34 in 1 : vector<24x1xf32>, vector<24x255xf32> -> vector<24x256xf32>
    %c3 = arith.constant 3 : index
    %c0_15 = arith.constant 0 : index
    %c0_16 = arith.constant 0 : index
    %36 = vector.load %arg4[%c3, %c0_15, %c0_16] : memref<9x24x256xf32, #tpu.memory_space<vmem>>, vector<1x24x256xf32>
    %37 = vector.shape_cast %36 : vector<1x24x256xf32> to vector<24x256xf32>
    %38 = arith.mulf %35, %37 : vector<24x256xf32>
    %39 = arith.addf %32, %38 : vector<24x256xf32>
    %c4 = arith.constant 4 : index
    %c0_17 = arith.constant 0 : index
    %c0_18 = arith.constant 0 : index
    %40 = vector.load %arg4[%c4, %c0_17, %c0_18] : memref<9x24x256xf32, #tpu.memory_space<vmem>>, vector<1x24x256xf32>
    %41 = vector.shape_cast %40 : vector<1x24x256xf32> to vector<24x256xf32>
    %42 = arith.mulf %9, %41 : vector<24x256xf32>
    %43 = arith.addf %39, %42 : vector<24x256xf32>
    %44 = vector.extract_strided_slice %9 {offsets = [0, 1], sizes = [24, 255], strides = [1, 1]} : vector<24x256xf32> to vector<24x255xf32>
    %45 = vector.extract_strided_slice %9 {offsets = [0, 0], sizes = [24, 1], strides = [1, 1]} : vector<24x256xf32> to vector<24x1xf32>
    %46 = tpu.concatenate %44, %45 in 1 : vector<24x255xf32>, vector<24x1xf32> -> vector<24x256xf32>
    %c5 = arith.constant 5 : index
    %c0_19 = arith.constant 0 : index
    %c0_20 = arith.constant 0 : index
    %47 = vector.load %arg4[%c5, %c0_19, %c0_20] : memref<9x24x256xf32, #tpu.memory_space<vmem>>, vector<1x24x256xf32>
    %48 = vector.shape_cast %47 : vector<1x24x256xf32> to vector<24x256xf32>
    %49 = arith.mulf %46, %48 : vector<24x256xf32>
    %50 = arith.addf %43, %49 : vector<24x256xf32>
    %51 = vector.extract_strided_slice %9 {offsets = [0, 15], sizes = [24, 241], strides = [1, 1]} : vector<24x256xf32> to vector<24x241xf32>
    %52 = vector.extract_strided_slice %9 {offsets = [0, 0], sizes = [24, 15], strides = [1, 1]} : vector<24x256xf32> to vector<24x15xf32>
    %53 = tpu.concatenate %51, %52 in 1 : vector<24x241xf32>, vector<24x15xf32> -> vector<24x256xf32>
    %c6 = arith.constant 6 : index
    %c0_21 = arith.constant 0 : index
    %c0_22 = arith.constant 0 : index
    %54 = vector.load %arg4[%c6, %c0_21, %c0_22] : memref<9x24x256xf32, #tpu.memory_space<vmem>>, vector<1x24x256xf32>
    %55 = vector.shape_cast %54 : vector<1x24x256xf32> to vector<24x256xf32>
    %56 = arith.mulf %53, %55 : vector<24x256xf32>
    %57 = arith.addf %50, %56 : vector<24x256xf32>
    %58 = vector.extract_strided_slice %9 {offsets = [0, 16], sizes = [24, 240], strides = [1, 1]} : vector<24x256xf32> to vector<24x240xf32>
    %59 = vector.extract_strided_slice %9 {offsets = [0, 0], sizes = [24, 16], strides = [1, 1]} : vector<24x256xf32> to vector<24x16xf32>
    %60 = tpu.concatenate %58, %59 in 1 : vector<24x240xf32>, vector<24x16xf32> -> vector<24x256xf32>
    %c7 = arith.constant 7 : index
    %c0_23 = arith.constant 0 : index
    %c0_24 = arith.constant 0 : index
    %61 = vector.load %arg4[%c7, %c0_23, %c0_24] : memref<9x24x256xf32, #tpu.memory_space<vmem>>, vector<1x24x256xf32>
    %62 = vector.shape_cast %61 : vector<1x24x256xf32> to vector<24x256xf32>
    %63 = arith.mulf %60, %62 : vector<24x256xf32>
    %64 = arith.addf %57, %63 : vector<24x256xf32>
    %65 = vector.extract_strided_slice %9 {offsets = [0, 17], sizes = [24, 239], strides = [1, 1]} : vector<24x256xf32> to vector<24x239xf32>
    %66 = vector.extract_strided_slice %9 {offsets = [0, 0], sizes = [24, 17], strides = [1, 1]} : vector<24x256xf32> to vector<24x17xf32>
    %67 = tpu.concatenate %65, %66 in 1 : vector<24x239xf32>, vector<24x17xf32> -> vector<24x256xf32>
    %c8 = arith.constant 8 : index
    %c0_25 = arith.constant 0 : index
    %c0_26 = arith.constant 0 : index
    %68 = vector.load %arg4[%c8, %c0_25, %c0_26] : memref<9x24x256xf32, #tpu.memory_space<vmem>>, vector<1x24x256xf32>
    %69 = vector.shape_cast %68 : vector<1x24x256xf32> to vector<24x256xf32>
    %70 = arith.mulf %67, %69 : vector<24x256xf32>
    %71 = arith.addf %64, %70 : vector<24x256xf32>
    %c0_27 = arith.constant 0 : index
    %c0_28 = arith.constant 0 : index
    %72 = vector.load %arg5[%c0_27, %c0_28] : memref<24x1xf32, #tpu.memory_space<vmem>>, vector<24x1xf32>
    %73 = vector.broadcast %72 : vector<24x1xf32> to vector<24x256xf32>
    %74 = arith.addf %71, %73 : vector<24x256xf32>
    %cst_29 = arith.constant 0.000000e+00 : f32
    %75 = vector.broadcast %cst_29 : f32 to vector<24x256xf32>
    %76 = arith.maximumf %74, %75 : vector<24x256xf32>
    %c0_30 = arith.constant 0 : index
    %c0_31 = arith.constant 0 : index
    %77 = vector.load %arg6[%c0_30, %c0_31] : memref<8x24xf32, #tpu.memory_space<vmem>>, vector<8x24xf32>
    %cst_32 = arith.constant dense<0.000000e+00> : vector<8x256xf32>
    %78 = tpu.matmul %77, %76, %cst_32 {dimension_numbers = #tpu.dot_dimension_numbers<[1], [0], [0], [1], [0, 0, 1, 1], [], []>} : vector<8x24xf32>, vector<24x256xf32>, vector<8x256xf32> -> vector<8x256xf32>
    %c0_33 = arith.constant 0 : index
    %c0_34 = arith.constant 0 : index
    %79 = vector.load %arg7[%c0_33, %c0_34] : memref<8x1xf32, #tpu.memory_space<vmem>>, vector<8x1xf32>
    %80 = vector.broadcast %79 : vector<8x1xf32> to vector<8x256xf32>
    %81 = arith.addf %78, %80 : vector<8x256xf32>
    %82 = arith.addf %81, %10 : vector<8x256xf32>
    %c0_35 = arith.constant 0 : index
    %c0_36 = arith.constant 0 : index
    %c0_37 = arith.constant 0 : index
    %83 = vector.load %arg8[%c0_35, %c0_36, %c0_37] : memref<1x8x256xf32, #tpu.memory_space<vmem>>, vector<1x8x256xf32>
    %84 = vector.shape_cast %83 : vector<1x8x256xf32> to vector<8x256xf32>
    %85 = vector.shape_cast %82 : vector<8x256xf32> to vector<1x8x256xf32>
    tpu.vector_store %arg8[%c0_35, %c0_36, %c0_37], %85 {strides = array<i32>} : memref<1x8x256xf32, #tpu.memory_space<vmem>>, vector<1x8x256xf32>,
    return
  }
  func.func @transform_0(%arg0: i32) -> (i32, i32, i32) {
    %c0_i32 = arith.constant 0 : i32
    %c0_i32_0 = arith.constant 0 : i32
    %c0_i32_1 = arith.constant 0 : i32
    return %arg0, %c0_i32, %c0_i32_0 : i32, i32, i32
  }
  func.func @transform_1(%arg0: i32) -> (i32, i32) {
    %c0_i32 = arith.constant 0 : i32
    %c0_i32_0 = arith.constant 0 : i32
    %c0_i32_1 = arith.constant 0 : i32
    return %c0_i32, %c0_i32_0 : i32, i32
  }
  func.func @transform_2(%arg0: i32) -> (i32, i32) {
    %c0_i32 = arith.constant 0 : i32
    %c0_i32_0 = arith.constant 0 : i32
    %c0_i32_1 = arith.constant 0 : i32
    return %c0_i32, %c0_i32_0 : i32, i32
  }
  func.func @transform_3(%arg0: i32) -> (i32, i32, i32) {
    %c0_i32 = arith.constant 0 : i32
    %c0_i32_0 = arith.constant 0 : i32
    %c0_i32_1 = arith.constant 0 : i32
    %c0_i32_2 = arith.constant 0 : i32
    return %c0_i32, %c0_i32_0, %c0_i32_1 : i32, i32, i32
  }
  func.func @transform_4(%arg0: i32) -> (i32, i32) {
    %c0_i32 = arith.constant 0 : i32
    %c0_i32_0 = arith.constant 0 : i32
    %c0_i32_1 = arith.constant 0 : i32
    return %c0_i32, %c0_i32_0 : i32, i32
  }
  func.func @transform_5(%arg0: i32) -> (i32, i32) {
    %c0_i32 = arith.constant 0 : i32
    %c0_i32_0 = arith.constant 0 : i32
    %c0_i32_1 = arith.constant 0 : i32
    return %c0_i32, %c0_i32_0 : i32, i32
  }
  func.func @transform_6(%arg0: i32) -> (i32, i32) {
    %c0_i32 = arith.constant 0 : i32
    %c0_i32_0 = arith.constant 0 : i32
    %c0_i32_1 = arith.constant 0 : i32
    return %c0_i32, %c0_i32_0 : i32, i32
  }
  func.func @transform_7(%arg0: i32) -> (i32, i32, i32) {
    %c0_i32 = arith.constant 0 : i32
    %c0_i32_0 = arith.constant 0 : i32
    %c0_i32_1 = arith.constant 0 : i32
    return %arg0, %c0_i32, %c0_i32_0 : i32, i32, i32
  }
}

</mosaic_0001>

<bundles_post_ra>
// kernel: tpu_custom_call.1
= control target key start
LH: loop header
LB: loop body
LE: loop exit
PB: predicated region body
PF: predicated region fallthrough
CT: control target
= control target key end

     0   :  { %12 = vsyncpa [#allocation3], 0  ;;  %s1594_s0 = inlined_call_operand.vmem [shape: f32[2,4,256], index: 0, kind: input, shape index: {}]   ;;  %s1595_s1 = inlined_call_operand.vmem [shape: f32[32,4], index: 1, kind: input, shape index: {}]   ;;  %s1596_s2 = inlined_call_operand.vmem [shape: f32[32,1], index: 2, kind: input, shape index: {}]   ;;  %s1597_s3 = inlined_call_operand.hbm [shape: f32[9,24,256], index: 3, kind: input, shape index: {}]   ;;  %s1598_s4 = inlined_call_operand.vmem [shape: f32[24,1], index: 4, kind: input, shape index: {}]   ;;  %s1599_s5 = inlined_call_operand.vmem [shape: f32[8,24], index: 5, kind: input, shape index: {}]   ;;  %s1600_s6 = inlined_call_operand.vmem [shape: f32[8,1], index: 6, kind: input, shape index: {}]   ;;  %s1601_s7 = inlined_call_operand.hbm [shape: f32[2,8,256], index: 7, kind: output, shape index: {}]  }
   0x1   :  { %13 = vsyncpa [#allocation4], 0 }
   0x2   :  { %15 = vsyncpa [#allocation4 + $0x1], 0  ;;  %s1226_s24 = smov 0   ;;  %s1228_s25 = smov 0  }
   0x3   :  { %s1230_s26 = smov 0   ;;  %s1232_s27 = smov 0  }
   0x4 LB: > { %s1247_s28 = sadd.s32 4294967295, %s1172_s27   ;;  %s982_s29 = sadd.s32 4294967294, %s1172_s27   ;;  %s1172_s27 = sphi %s1232_s27, %s1607_s27   ;;  %s1168_s26 = sphi %s1230_s26, %s1606_s26   ;;  %s1164_s25 = sphi %s1228_s25, %s1605_s25   ;;  %s1160_s24 = sphi %s1226_s24, %s1604_s24  }
   0x5   : > { %s1251_s30 = sadd.s32 1, %s1172_s27   ;;  %s180_s8 = sadd.s32 1, %s1168_s26 }
   0x6   : > { %s177_s9 = ssub.s32 %s1172_s27, %s1251_s30  ;;  %p190_p0 = scmp.ne.s32.totalorder %s1168_s26, %s1164_s25 }
   0x7   : > { %p178_p1 = scmp.eq.s32.totalorder %s177_s9, 0  ;;  %p191_p2 = scmp.eq.s32.totalorder %s1247_s28, 1 }
   0x8   : > { %p196_p3 = scmp.ne.s32.totalorder %s1164_s25, %s1160_s24  ;;  %p197_p4 = scmp.eq.s32.totalorder %s982_s29, 1 }
   0x9   : > { %s1262_s10 = scalar_select %p178_p1, %s1168_s26, %s180_s8  }
   0xa   : > { %p1264_p5 = por %p191_p2, %p190_p0  ;;  %p1268_p6 = por %p197_p4, %p196_p3 }
   0xb   : > { %p983_p7 = scmp.ge.s32.totalorder %s1172_s27, 1  ;;  %p204_p8 = scmp.lt.s32.totalorder %s1172_s27, 3 }
   0xc   : > { %p1026_p9 = scmp.eq.s32.totalorder %s1247_s28, 0  ;;  %s221_s15 = sshll.u32 %s1597_s3, 4  ;;  %s222_s15 = int_to_ptr.hbm [resolvable:$true] %s221_s15 }
   0xd   : > { %p205_p10 = pnand %p983_p7, %p204_p8  ;;  %s1174_s16 = smov [#allocation2]  }
   0xe   : > { %s223_s17 = sshll.u32 %s1174_s16, 4  ;;  %s1175_s18 = smov 256   ;;  %s224_s17 = int_to_ptr.vmem [resolvable:$true] %s223_s17 }
   0xf   : > { %p1018_p11 = pneg %p205_p10  ;;  %s1176_s19 = smov 16  }
  0x10   : > { %256 = sbr.rel (%p205_p10) target bundleno = 558 (0x22e), region = 48 }
  0x11   : > { %p1019_p12 = pnand %p1026_p9, %p1018_p11 }
  0x13   : > { %1021 = dma.hbm_to_vmem [thread:$0]  (!%p1019_p12), %s222_s15, 6912, %s224_s17, [#allocation3], %s1175_s18, %s1175_s18, %s1176_s19  }
  0x15   : > { %1151 = dma.done.wait (%p1026_p9), [#allocation3], 6912  }
  0x16   : > { %1153 = vsyncadd (%p1026_p9), [#allocation3], 4294960384  ;;  %p289_p13 = scmp.lt.s32.totalorder %s1247_s28, 1  ;;  %v1177_v0 = vmov 0   ;;  %v299_v2 = vld [vmem:[%s1596_s2] sm:$0xff]  ;;  %v301_v3 = vld [vmem:[%s1596_s2 + $0x10] sm:$0xff] }
  0x17   : > { %1074 = vset.pattern.permute.xlu1 %v1177_v0  ;;  %1073 = vset.pattern.permute.xlu0 %v1177_v0  ;;  %vm340_vm0 = vcmask 1043456   ;;  %v295_v4 = vld [vmem:[%s1595_s1] sm:$0xff]  ;;  %vm327_vm1 = vcmask 31744   ;;  %v300_v5 = vld [vmem:[%s1596_s2 + $0x8] sm:$0xff]  ;;  %v297_v9 = vld [vmem:[%s1595_s1 + $0x10] sm:$0xff]  ;;  %s1178_s23 = smov 16  }
  0x18   : > { %s290_s20 = scalar_select %p289_p13, %s1247_s28, 1  ;;  %1075 = vset.pattern.permute.xlu2 %v1177_v0  ;;  %305 = vperm.xlu1 %1074, %v299_v2   ;;  %v296_v8 = vld [vmem:[%s1595_s1 + $0x8] sm:$0xff]  ;;  %v298_v31 = vld [vmem:[%s1595_s1 + $0x18] sm:$0xff]  ;;  %vm430_vm2 = vcmask 138240   ;;  %v811_v40 = vld [vmem:[%s1598_s4 + $0x10] sm:$0xff]  ;;  %vm476_vm3 = vcmask 130048  }
  0x19   : > { %315 = vperm.xlu0 %1073, %v301_v3   ;;  %s1180_s8 = smov 15   ;;  %s1181_s9 = smov 1   ;;  %v443_v41 = vld [vmem:[#allocation2] sm:$0xff]  ;;  %v444_v42 = vld [vmem:[#allocation2 + $0x8] sm:$0xff]  ;;  %v490_v43 = vld [vmem:[#allocation2 + $0x30] sm:$0xff]  ;;  %vm523_vm4 = vcmask 121856  }
  0x1a   : > { %s1008_s21 = sshll.u32 %s290_s20, 3  ;;  %s1182_s13 = smov 127   ;;  %v491_v44 = vld [vmem:[#allocation2 + $0x38] sm:$0xff]  ;;  %v302_v54 = vld [vmem:[%s1596_s2 + $0x18] sm:$0xff]  ;;  %v810_v55 = vld [vmem:[%s1598_s4 + $0x8] sm:$0xff]  ;;  %vm570_vm5 = vcmask 7168  }
  0x1b   : > { %s293_s29 = scalar_lea.vmem %s1594_s0, %s1008_s21  ;;  %s1183_s14 = smov 113   ;;  %v537_v58 = vld [vmem:[#allocation2 + $0x60] sm:$0xff]  ;;  %v538_v59 = vld [vmem:[#allocation2 + $0x68] sm:$0xff]  ;;  %v840_v3 = vld [vmem:[%s1600_s6] sm:$0xff]  ;;  %vm633_vm6 = vcmask 1039360   ;;  %vm680_vm7 = vcmask 924672  }
  0x1c   : > { %v294_v1 = vld [vmem:[%s293_s29] sm:$0xff]  ;;  %s1179_s29 = smov 17   ;;  %s1184_s15 = smov 112   ;;  %vm727_vm8 = vcmask 916480   ;;  %vm774_vm9 = vcmask 908288   ;;  %vm846_vm10 = vcmask 195584  }
  0x1d   : > { %324 = vst [vmem:[#allocation1] ss:$2 sm:$0xff] %v294_v1  ;;  %s1185_s16 = smov 111   ;;  %s286_s17 = sand.u32 1, %s1164_s25  }
  0x1e   : > { %s988_s18 = sshll.u32 %s286_s17, 4  ;;  %s1009_s19 = sshll.u32 %s1247_s28, 4 }
  0x1f   : > { %s906_s22 = scalar_lea.hbm %s1601_s7, %s1009_s19  ;;  %s895_s28 = scalar_lea.sflag [#allocation4], %s286_s17 }
  0x21   : > { %310 = vperm.xlu0 %1073, %v300_v5  }
  0x24   : > { %v325_v6 = vld.sshfl [vmem:[#allocation1] sm:$0xff pattern:$0x75316420]  ;;  %v326_v7 = vld.sshfl [vmem:[#allocation1 + $0x8] sm:$0xff pattern:$0x75316420] }
  0x25   : > { %991 = vmatpush.msk.msra.mxu0 %vm340_vm0, %v325_v6  ;;  %996 = vmatpush.msk.msra.mxu1 %vm340_vm0, %v326_v7 }
  0x26   : > { %992 = vmatmul.msk.f32.vlgmr.msra.gmra.mxu0 %vm327_vm1, %v295_v4  ;;  %997 = vmatmul.msk.f32.vlgmr.msra.gmra.mxu1 %vm327_vm1, %v295_v4 }
  0x27   : > { %1010 = vmatpush.msk.msra.mxu2 %vm340_vm0, %v325_v6  ;;  %1011 = vmatpush.msk.msra.mxu3 %vm340_vm0, %v326_v7  ;;  %v809_v6 = vld [vmem:[%s1598_s4] sm:$0xff]  ;;  %v584_v7 = vld [vmem:[#allocation2 + $0x90] sm:$0xff] }
  0x28   : > { %995 = vmatmul.msk.f32.vlgmr.msra.gmra.mxu2 %vm327_vm1, %v298_v31  ;;  %1000 = vmatmul.msk.f32.vlgmr.msra.gmra.mxu3 %vm327_vm1, %v298_v31 }
  0x2e   : > { %993 = vmatmul.msk.f32.gmra.mxu0 %vm327_vm1, %v296_v8  ;;  %998 = vmatmul.msk.f32.gmra.mxu1 %vm327_vm1, %v296_v8  ;;  %v585_v8 = vld [vmem:[#allocation2 + $0x98] sm:$0xff] }
  0x36   : > { %994 = vmatmul.msk.f32.gmra.mxu0 %vm327_vm1, %v297_v9  ;;  %999 = vmatmul.msk.f32.gmra.mxu1 %vm327_vm1, %v297_v9 }
  0x8a   : > { %v306_v10 = vpop.permute.xlu1 %305 }
  0x8b   : > { %v316_v15 = vpop.permute.xlu0 %315 }
  0x93   : > { %v311_v18 = vpop.permute.xlu0 %310 }
  0xa3   : > { %v362_v11 = vpop.f32.mrf.mxu0  ;;  %v391_v12 = vpop.f32.mrf.mxu1 }
  0xa4   : > { %v363_v13 = vadd.f32 %v362_v11, %v306_v10  ;;  %v392_v14 = vadd.f32 %v391_v12, %v306_v10 }
  0xa6   : > { %v1313_v16 = vmax.f32 %v363_v13, 0.0  ;;  %v1315_v17 = vmax.f32 %v392_v14, 0.0 }
  0xa8   : > { %461 = vrot.lane.b32.xlu0 %v1315_v17, %s1178_s23  ;;  %412 = vrot.lane.b32.xlu1 %v1315_v17, %s1179_s29 }
  0xa9   : > { %424 = vrot.lane.b32.xlu2 %v1313_v16, %s1179_s29 }
  0xab   : > { %v365_v19 = vpop.f32.mrf.mxu0  ;;  %v394_v22 = vpop.f32.mrf.mxu1 }
  0xac   : > { %v366_v20 = vadd.f32 %v365_v19, %v311_v18  ;;  %v395_v23 = vadd.f32 %v394_v22, %v311_v18  ;;  %v604_v22 = vld [vmem:[#allocation2 + $0xc8] sm:$0xff] }
  0xae   : > { %v1329_v21 = vmax.f32 %v366_v20, 0.0  ;;  %v1337_v24 = vmax.f32 %v395_v23, 0.0  ;;  %v603_v20 = vld [vmem:[#allocation2 + $0xc0] sm:$0xff]  ;;  %v650_v23 = vld [vmem:[#allocation2 + $0xf0] sm:$0xff] }
  0xaf   : > { %v609_v31 = vmul.f32 %v603_v20, %v1313_v16 }
  0xb0   : > { %508 = vrot.lane.b32.xlu0 %v1315_v17, %s1180_s8  ;;  %470 = vrot.lane.b32.xlu1 %v1313_v16, %s1178_s23 }
  0xb1   : > { %564 = vrot.lane.b32.xlu2 %v1313_v16, %s1181_s9 }
  0xb3   : > { %v397_v25 = vpop.f32.mrf.mxu1  ;;  %v368_v26 = vpop.f32.mrf.mxu0 }
  0xb4   : > { %v398_v27 = vadd.f32 %v397_v25, %v316_v15  ;;  %v369_v28 = vadd.f32 %v368_v26, %v316_v15  ;;  %v651_v25 = vld [vmem:[#allocation2 + $0xf8] sm:$0xff] }
  0xb6   : > { %v1375_v29 = vmax.f32 %v398_v27, 0.0  ;;  %v1377_v30 = vmax.f32 %v369_v28, 0.0  ;;  %v610_v27 = vmul.f32 %v604_v22, %v1315_v17 }
  0xb8   : > { %621 = vrot.lane.b32.xlu0 %v1313_v16, %s1182_s13  ;;  %517 = vrot.lane.b32.xlu1 %v1313_v16, %s1180_s8 }
  0xb9   : > { %426 = vrot.lane.b32.xlu2 %v1329_v21, %s1179_s29 }
  0xc0   : > { %668 = vrot.lane.b32.xlu0 %v1313_v16, %s1183_s14  ;;  %555 = vrot.lane.b32.xlu1 %v1315_v17, %s1181_s9 }
  0xc1   : > { %510 = vrot.lane.b32.xlu2 %v1337_v24, %s1180_s8 }
  0xc8   : > { %715 = vrot.lane.b32.xlu0 %v1313_v16, %s1184_s15  ;;  %623 = vrot.lane.b32.xlu1 %v1315_v17, %s1182_s13 }
  0xc9   : > { %557 = vrot.lane.b32.xlu2 %v1337_v24, %s1181_s9 }
  0xd0   : > { %463 = vrot.lane.b32.xlu0 %v1337_v24, %s1178_s23  ;;  %670 = vrot.lane.b32.xlu1 %v1315_v17, %s1183_s14 }
  0xd1   : > { %625 = vrot.lane.b32.xlu2 %v1329_v21, %s1182_s13 }
  0xd8   : > { %519 = vrot.lane.b32.xlu0 %v1329_v21, %s1180_s8  ;;  %717 = vrot.lane.b32.xlu1 %v1315_v17, %s1184_s15 }
  0xd9   : > { %672 = vrot.lane.b32.xlu2 %v1329_v21, %s1183_s14 }
  0xe0   : > { %566 = vrot.lane.b32.xlu0 %v1329_v21, %s1181_s9  ;;  %414 = vrot.lane.b32.xlu1 %v1337_v24, %s1179_s29 }
  0xe1   : > { %719 = vrot.lane.b32.xlu2 %v1329_v21, %s1184_s15 }
  0xe8   : > { %627 = vrot.lane.b32.xlu0 %v1337_v24, %s1182_s13  ;;  %472 = vrot.lane.b32.xlu1 %v1329_v21, %s1178_s23 }
  0xe9   : > { %766 = vrot.lane.b32.xlu2 %v1329_v21, %s1185_s16 }
  0xf0   : > { %674 = vrot.lane.b32.xlu0 %v1337_v24, %s1183_s14  ;;  %416 = vrot.lane.b32.xlu1 %v1375_v29, %s1179_s29 }
  0xf1   : > { %428 = vrot.lane.b32.xlu2 %v1377_v30, %s1179_s29 }
  0xf8   : > { %721 = vrot.lane.b32.xlu0 %v1337_v24, %s1184_s15  ;;  %559 = vrot.lane.b32.xlu1 %v1375_v29, %s1181_s9 }
  0xf9   : > { %465 = vrot.lane.b32.xlu2 %v1375_v29, %s1178_s23 }
 0x100   : > { %474 = vrot.lane.b32.xlu0 %v1377_v30, %s1178_s23  ;;  %762 = vrot.lane.b32.xlu1 %v1313_v16, %s1185_s16  ;;  %s288_s23 = scalar_lea.vmem [#allocation5], %s988_s18 }
 0x101   : > { %512 = vrot.lane.b32.xlu2 %v1375_v29, %s1180_s8  ;;  %s908_s29 = sshll.u32 %s288_s23, 4  ;;  %s909_s29 = int_to_ptr.vmem [resolvable:$true] %s908_s29 }
 0x103   : > { %v425_v32 = vpop.permute.xlu2 %424 }
 0x108   : > { %521 = vrot.lane.b32.xlu0 %v1377_v30, %s1180_s8  ;;  %631 = vrot.lane.b32.xlu1 %v1375_v29, %s1182_s13  ;;  %s910_s8 = sshll.u32 %s906_s22, 4  ;;  %s911_s8 = int_to_ptr.hbm [resolvable:$true] %s910_s8 }
 0x109   : > { %568 = vrot.lane.b32.xlu2 %v1377_v30, %s1181_s9  ;;  %s1120_s9 = sshra.s32 %s911_s8, 4  ;;  %s1121_s9 = int_to_ptr.hbm [resolvable:$true] %s1120_s9 }
 0x10a   : > { %p1127_p3 = scmp.lt.s32.totalorder %s1121_s9, %s1601_s7 }
 0x10b   : > { %v565_v33 = vpop.permute.xlu2 %564 }
 0x110   : > { %629 = vrot.lane.b32.xlu0 %v1377_v30, %s1182_s13  ;;  %676 = vrot.lane.b32.xlu1 %v1377_v30, %s1183_s14  ;;  %s1122_s13 = scalar_lea.hbm %s1121_s9, 16 }
 0x111   : > { %678 = vrot.lane.b32.xlu2 %v1375_v29, %s1183_s14  ;;  %p1123_p0 = scmp.ne.s32.totalorder %s1121_s9, %s1122_s13 }
 0x113   : > { %v1414_v34 = vpop.permute.xlu2 %426  ;;  %p1124_p1 = pnand %p1123_p0, %p1264_p5 }
 0x115   : > { %p1125_p2 = pneg %p1124_p1 }
 0x118   : > { %768 = vrot.lane.b32.xlu0 %v1337_v24, %s1185_s16  ;;  %723 = vrot.lane.b32.xlu1 %v1377_v30, %s1184_s15 }
 0x119   : > { %725 = vrot.lane.b32.xlu2 %v1375_v29, %s1184_s15 }
 0x11a   : > { %v462_v35 = vpop.permute.xlu0 %461  ;;  %v413_v36 = vpop.permute.xlu1 %412 }
 0x11b   : > { %v431_v37 = vsel %vm430_vm2, %v425_v32, %v413_v36  ;;  %v440_v38 = vsel %vm430_vm2, %v413_v36, %v425_v32  ;;  %v1424_v39 = vpop.permute.xlu2 %510 }
 0x11c   : > { %v449_v50 = vmul.f32 %v443_v41, %v440_v38  ;;  %v450_v51 = vmul.f32 %v444_v42, %v431_v37 }
 0x120   : > { %824 = vperm.xlu0 %1073, %v811_v40   ;;  %770 = vrot.lane.b32.xlu1 %v1377_v30, %s1185_s16 }
 0x121   : > { %772 = vrot.lane.b32.xlu2 %v1375_v29, %s1185_s16 }
 0x122   : > { %v509_v45 = vpop.permute.xlu0 %508  ;;  %v471_v46 = vpop.permute.xlu1 %470 }
 0x123   : > { %v477_v47 = vsel %vm476_vm3, %v471_v46, %v462_v35  ;;  %v486_v48 = vsel %vm476_vm3, %v462_v35, %v471_v46  ;;  %v1435_v49 = vpop.permute.xlu2 %557 }
 0x124   : > { %v496_v52 = vmul.f32 %v490_v43, %v486_v48  ;;  %v497_v53 = vmul.f32 %v491_v44, %v477_v47  ;;  %v697_v43 = vld [vmem:[#allocation2 + $0x120] sm:$0xff]  ;;  %v698_v44 = vld [vmem:[#allocation2 + $0x128] sm:$0xff] }
 0x126   : > { %v502_v56 = vadd.f32 %v496_v52, %v449_v50  ;;  %v503_v57 = vadd.f32 %v497_v53, %v450_v51  ;;  %v744_v53 = vld [vmem:[#allocation2 + $0x150] sm:$0xff] }
 0x128   : > { %320 = vperm.xlu0 %1073, %v302_v54   ;;  %819 = vperm.xlu1 %1074, %v810_v55   ;;  %v745_v54 = vld [vmem:[#allocation2 + $0x158] sm:$0xff] }
 0x129   : > { %764 = vrot.lane.b32.xlu2 %v1315_v17, %s1185_s16  ;;  %s1126_s16 = scalar_lea.hbm %s1601_s7, 32 }
 0x12a   : > { %v622_v60 = vpop.permute.xlu0 %621  ;;  %v518_v61 = vpop.permute.xlu1 %517  ;;  %p1128_p4 = scmp.lt.s32.totalorder %s1126_s16, %s1122_s13 }
 0x12b   : > { %v524_v62 = vsel %vm523_vm4, %v518_v61, %v509_v45  ;;  %v533_v63 = vsel %vm523_vm4, %v509_v45, %v518_v61  ;;  %v1447_v0 = vpop.permute.xlu2 %625 }
 0x12c   : > { %v543_v1 = vmul.f32 %v537_v58, %v533_v63  ;;  %v544_v2 = vmul.f32 %v538_v59, %v524_v62  ;;  %p1129_p7 = por %p1128_p4, %p1127_p3 }
 0x12e   : > { %v549_v4 = vadd.f32 %v543_v1, %v502_v56  ;;  %v550_v5 = vadd.f32 %v544_v2, %v503_v57  ;;  %p1130_p8 = pnand %p1129_p7, %p1125_p2 }
 0x130   : > { %843 = vperm.xlu1 %1074, %v840_v3  }
 0x131   : > { %814 = vperm.xlu2 %1075, %v809_v6  }
 0x132   : > { %v669_v9 = vpop.permute.xlu0 %668  ;;  %v556_v10 = vpop.permute.xlu1 %555 }
 0x133   : > { %v571_v11 = vsel %vm570_vm5, %v565_v33, %v556_v10  ;;  %v580_v12 = vsel %vm570_vm5, %v556_v10, %v565_v33  ;;  %v1457_v13 = vpop.permute.xlu2 %672 }
 0x134   : > { %v590_v14 = vmul.f32 %v584_v7, %v580_v12  ;;  %v591_v15 = vmul.f32 %v585_v8, %v571_v11  ;;  %v492_v8 = vld [vmem:[#allocation2 + $0x40] sm:$0xff]  ;;  %v539_v12 = vld [vmem:[#allocation2 + $0x70] sm:$0xff] }
 0x136   : > { %v596_v18 = vadd.f32 %v590_v14, %v549_v4  ;;  %v597_v19 = vadd.f32 %v591_v15, %v550_v5  ;;  %v445_v4 = vld [vmem:[#allocation2 + $0x10] sm:$0xff]  ;;  %v446_v5 = vld [vmem:[#allocation2 + $0x18] sm:$0xff] }
 0x137   : > { %v540_v14 = vld [vmem:[#allocation2 + $0x78] sm:$0xff] }
 0x138   : > { %v615_v36 = vadd.f32 %v609_v31, %v596_v18  ;;  %v616_v37 = vadd.f32 %v610_v27, %v597_v19  ;;  %v586_v27 = vld [vmem:[#allocation2 + $0xa0] sm:$0xff] }
 0x13a   : > { %v716_v26 = vpop.permute.xlu0 %715  ;;  %v624_v28 = vpop.permute.xlu1 %623 }
 0x13b   : > { %v634_v32 = vsel %vm633_vm6, %v622_v60, %v624_v28  ;;  %v646_v33 = vsel %vm633_vm6, %v624_v28, %v622_v60  ;;  %v1463_v35 = vpop.permute.xlu2 %719  ;;  %v587_v28 = vld [vmem:[#allocation2 + $0xa8] sm:$0xff] }
 0x13c   : > { %v656_v38 = vmul.f32 %v650_v23, %v634_v32  ;;  %v657_v40 = vmul.f32 %v651_v25, %v646_v33 }
 0x13e   : > { %v662_v41 = vadd.f32 %v656_v38, %v615_v36  ;;  %v663_v42 = vadd.f32 %v657_v40, %v616_v37  ;;  %v605_v38 = vld [vmem:[#allocation2 + $0xd0] sm:$0xff]  ;;  %v606_v40 = vld [vmem:[#allocation2 + $0xd8] sm:$0xff] }
 0x142   : > { %v464_v45 = vpop.permute.xlu0 %463  ;;  %v671_v17 = vpop.permute.xlu1 %670 }
 0x143   : > { %v681_v46 = vsel %vm680_vm7, %v669_v9, %v671_v17  ;;  %v693_v16 = vsel %vm680_vm7, %v671_v17, %v669_v9  ;;  %v1467_v47 = vpop.permute.xlu2 %766  ;;  %v493_v9 = vld [vmem:[#allocation2 + $0x48] sm:$0xff] }
 0x144   : > { %v703_v48 = vmul.f32 %v697_v43, %v681_v46  ;;  %v704_v50 = vmul.f32 %v698_v44, %v693_v16  ;;  %v653_v17 = vld [vmem:[#allocation2 + $0x108] sm:$0xff] }
 0x146   : > { %v709_v51 = vadd.f32 %v703_v48, %v662_v41  ;;  %v710_v52 = vadd.f32 %v704_v50, %v663_v42  ;;  %v611_v50 = vmul.f32 %v605_v38, %v1329_v21  ;;  %v542_v38 = vld [vmem:[#allocation2 + $0x88] sm:$0xff] }
 0x14a   : > { %v520_v55 = vpop.permute.xlu0 %519  ;;  %v718_v56 = vpop.permute.xlu1 %717 }
 0x14b   : > { %v728_v57 = vsel %vm727_vm8, %v716_v26, %v718_v56  ;;  %v740_v58 = vsel %vm727_vm8, %v718_v56, %v716_v26  ;;  %v1471_v59 = vpop.permute.xlu2 %428  ;;  %v525_v15 = vsel %vm523_vm4, %v520_v55, %v1424_v39  ;;  %v534_v18 = vsel %vm523_vm4, %v1424_v39, %v520_v55  ;;  %v700_v55 = vld [vmem:[#allocation2 + $0x138] sm:$0xff] }
 0x14c   : > { %v750_v60 = vmul.f32 %v744_v53, %v728_v57  ;;  %v751_v61 = vmul.f32 %v745_v54, %v740_v58  ;;  %v545_v33 = vmul.f32 %v539_v12, %v534_v18  ;;  %v546_v39 = vmul.f32 %v540_v14, %v525_v15  ;;  %v699_v54 = vld [vmem:[#allocation2 + $0x130] sm:$0xff] }
 0x14e   : > { %v1473_v62 = vadd.f32 %v751_v61, %v710_v52  ;;  %v1475_v63 = vadd.f32 %v750_v60, %v709_v51  ;;  %v612_v51 = vmul.f32 %v606_v40, %v1337_v24 }
 0x152   : > { %v567_v1 = vpop.permute.xlu0 %566  ;;  %v415_v2 = vpop.permute.xlu1 %414 }
 0x153   : > { %v1477_v3 = vpop.permute.xlu2 %465  ;;  %v432_v6 = vsel %vm430_vm2, %v1414_v34, %v415_v2  ;;  %v441_v7 = vsel %vm430_vm2, %v415_v2, %v1414_v34  ;;  %v572_v31 = vsel %vm570_vm5, %v567_v1, %v1435_v49  ;;  %v581_v32 = vsel %vm570_vm5, %v1435_v49, %v567_v1 }
 0x154   : > { %v451_v23 = vmul.f32 %v445_v4, %v441_v7  ;;  %v452_v34 = vmul.f32 %v446_v5, %v432_v6  ;;  %v592_v41 = vmul.f32 %v586_v27, %v581_v32  ;;  %v593_v42 = vmul.f32 %v587_v28, %v572_v31  ;;  %v746_v7 = vld [vmem:[#allocation2 + $0x160] sm:$0xff]  ;;  %v494_v27 = vld [vmem:[#allocation2 + $0x50] sm:$0xff]  ;;  %v495_v28 = vld [vmem:[#allocation2 + $0x58] sm:$0xff] }
 0x155   : > { %v447_v32 = vld [vmem:[#allocation2 + $0x20] sm:$0xff] }
 0x15a   : > { %v628_v10 = vpop.permute.xlu0 %627  ;;  %v473_v11 = vpop.permute.xlu1 %472 }
 0x15b   : > { %v478_v19 = vsel %vm476_vm3, %v473_v11, %v464_v45  ;;  %v487_v20 = vsel %vm476_vm3, %v464_v45, %v473_v11  ;;  %v1489_v22 = vpop.permute.xlu2 %512  ;;  %v652_v45 = vld [vmem:[#allocation2 + $0x100] sm:$0xff]  ;;  %v635_v46 = vsel %vm633_vm6, %v1447_v0, %v628_v10  ;;  %v647_v16 = vsel %vm633_vm6, %v628_v10, %v1447_v0 }
 0x15c   : > { %v498_v25 = vmul.f32 %v492_v8, %v487_v20  ;;  %v499_v26 = vmul.f32 %v493_v9, %v478_v19  ;;  %v658_v58 = vmul.f32 %v652_v45, %v635_v46  ;;  %v659_v60 = vmul.f32 %v653_v17, %v647_v16  ;;  %v747_v8 = vld [vmem:[#allocation2 + $0x168] sm:$0xff] }
 0x15e   : > { %v504_v36 = vadd.f32 %v498_v25, %v451_v23  ;;  %v505_v37 = vadd.f32 %v499_v26, %v452_v34 }
 0x160   : > { %v551_v43 = vadd.f32 %v545_v33, %v504_v36  ;;  %v552_v44 = vadd.f32 %v546_v39, %v505_v37  ;;  %v448_v33 = vld [vmem:[#allocation2 + $0x28] sm:$0xff]  ;;  %v541_v37 = vld [vmem:[#allocation2 + $0x80] sm:$0xff] }
 0x162   : > { %v598_v48 = vadd.f32 %v592_v41, %v551_v43  ;;  %v599_v49 = vadd.f32 %v593_v42, %v552_v44  ;;  %v675_v52 = vpop.permute.xlu0 %674  ;;  %v417_v53 = vpop.permute.xlu1 %416 }
 0x163   : > { %v682_v56 = vsel %vm680_vm7, %v1457_v13, %v675_v52  ;;  %v694_v57 = vsel %vm680_vm7, %v675_v52, %v1457_v13  ;;  %v569_v1 = vpop.permute.xlu2 %568  ;;  %v433_v39 = vsel %vm430_vm2, %v1471_v59, %v417_v53  ;;  %v442_v36 = vsel %vm430_vm2, %v417_v53, %v1471_v59  ;;  %v589_v59 = vld [vmem:[#allocation2 + $0xb8] sm:$0xff] }
 0x164   : > { %v617_v61 = vadd.f32 %v611_v50, %v598_v48  ;;  %v618_v0 = vadd.f32 %v612_v51, %v599_v49  ;;  %v705_v21 = vmul.f32 %v699_v54, %v682_v56  ;;  %v706_v5 = vmul.f32 %v700_v55, %v694_v57  ;;  %v588_v50 = vld [vmem:[#allocation2 + $0xb0] sm:$0xff]  ;;  %v607_v57 = vld [vmem:[#allocation2 + $0xe0] sm:$0xff] }
 0x165   : > { %v453_v44 = vmul.f32 %v447_v32, %v442_v36 }
 0x166   : > { %v664_v2 = vadd.f32 %v658_v58, %v617_v61  ;;  %v665_v4 = vadd.f32 %v659_v60, %v618_v0  ;;  %v608_v58 = vld [vmem:[#allocation2 + $0xe8] sm:$0xff]  ;;  %v654_v60 = vld [vmem:[#allocation2 + $0x110] sm:$0xff]  ;;  %v655_v61 = vld [vmem:[#allocation2 + $0x118] sm:$0xff] }
 0x168   : > { %v711_v24 = vadd.f32 %v705_v21, %v664_v2  ;;  %v712_v6 = vadd.f32 %v706_v5, %v665_v4  ;;  %v613_v5 = vmul.f32 %v607_v57, %v1377_v30 }
 0x16a   : > { %v722_v9 = vpop.permute.xlu0 %721  ;;  %v560_v10 = vpop.permute.xlu1 %559 }
 0x16b   : > { %v729_v11 = vsel %vm727_vm8, %v1463_v35, %v722_v9  ;;  %v741_v13 = vsel %vm727_vm8, %v722_v9, %v1463_v35  ;;  %v1513_v19 = vpop.permute.xlu2 %678  ;;  %v573_v51 = vsel %vm570_vm5, %v569_v1, %v560_v10  ;;  %v582_v52 = vsel %vm570_vm5, %v560_v10, %v569_v1 }
 0x16c   : > { %v752_v12 = vmul.f32 %v746_v7, %v729_v11  ;;  %v753_v14 = vmul.f32 %v747_v8, %v741_v13  ;;  %v595_v56 = vmul.f32 %v589_v59, %v573_v51  ;;  %v614_v1 = vmul.f32 %v608_v58, %v1375_v29 }
 0x16e   : > { %v1509_v15 = vadd.f32 %v752_v12, %v711_v24  ;;  %v1511_v18 = vadd.f32 %v753_v14, %v712_v6  ;;  %v793_v24 = vld [vmem:[#allocation2 + $0x190] sm:$0xff]  ;;  %v794_v6 = vld [vmem:[#allocation2 + $0x198] sm:$0xff] }
 0x172   : > { %v475_v20 = vpop.permute.xlu0 %474  ;;  %v1515_v23 = vpop.permute.xlu1 %762 }
 0x173   : > { %v1517_v34 = vpop.permute.xlu2 %725  ;;  %v479_v35 = vsel %vm476_vm3, %v475_v20, %v1477_v3  ;;  %v488_v31 = vsel %vm476_vm3, %v1477_v3, %v475_v20  ;;  %v454_v3 = vmul.f32 %v448_v33, %v433_v39  ;;  %v701_v20 = vld [vmem:[#allocation2 + $0x140] sm:$0xff] }
 0x174   : > { %v500_v42 = vmul.f32 %v494_v27, %v488_v31  ;;  %v501_v43 = vmul.f32 %v495_v28, %v479_v35  ;;  %v748_v28 = vld [vmem:[#allocation2 + $0x170] sm:$0xff]  ;;  %v749_v35 = vld [vmem:[#allocation2 + $0x178] sm:$0xff] }
 0x176   : > { %v506_v46 = vadd.f32 %v500_v42, %v453_v44  ;;  %v507_v16 = vadd.f32 %v501_v43, %v454_v3  ;;  %v796_v43 = vld [vmem:[#allocation2 + $0x1a8] sm:$0xff] }
 0x17a   : > { %v522_v25 = vpop.permute.xlu0 %521  ;;  %v632_v26 = vpop.permute.xlu1 %631 }
 0x17b   : > { %v526_v40 = vsel %vm523_vm4, %v522_v25, %v1489_v22  ;;  %v535_v41 = vsel %vm523_vm4, %v1489_v22, %v522_v25  ;;  %v773_v55 = vpop.permute.xlu2 %772  ;;  %v594_v22 = vmul.f32 %v588_v50, %v582_v52 }
 0x17c   : > { %v547_v45 = vmul.f32 %v541_v37, %v535_v41  ;;  %v548_v17 = vmul.f32 %v542_v38, %v526_v40 }
 0x17e   : > { %v553_v53 = vadd.f32 %v547_v45, %v506_v46  ;;  %v554_v54 = vadd.f32 %v548_v17, %v507_v16  ;;  %v791_v45 = vld [vmem:[#allocation2 + $0x180] sm:$0xff]  ;;  %v792_v17 = vld [vmem:[#allocation2 + $0x188] sm:$0xff] }
 0x180   : > { %v600_v4 = vadd.f32 %v594_v22, %v553_v53  ;;  %v601_v21 = vadd.f32 %v595_v56, %v554_v54 }
 0x182   : > { %v630_v48 = vpop.permute.xlu0 %629  ;;  %v677_v49 = vpop.permute.xlu1 %676  ;;  %v619_v12 = vadd.f32 %v613_v5, %v600_v4  ;;  %v620_v14 = vadd.f32 %v614_v1, %v601_v21 }
 0x183   : > { %v636_v0 = vsel %vm633_vm6, %v630_v48, %v632_v26  ;;  %v648_v2 = vsel %vm633_vm6, %v632_v26, %v630_v48  ;;  %v702_v26 = vld [vmem:[#allocation2 + $0x148] sm:$0xff]  ;;  %v683_v29 = vsel %vm680_vm7, %v677_v49, %v1513_v19  ;;  %v695_v27 = vsel %vm680_vm7, %v1513_v19, %v677_v49  ;;  %v765_v39 = vpop.permute.xlu2 %764  ;;  %v795_v19 = vld [vmem:[#allocation2 + $0x1a0] sm:$0xff] }
 0x184   : > { %v660_v7 = vmul.f32 %v654_v60, %v636_v0  ;;  %v661_v8 = vmul.f32 %v655_v61, %v648_v2  ;;  %v707_v38 = vmul.f32 %v701_v20, %v683_v29  ;;  %v708_v40 = vmul.f32 %v702_v26, %v695_v27 }
 0x185   : > { %v787_v46 = vsel %vm774_vm9, %v765_v39, %v1515_v23 }
 0x186   : > { %v666_v32 = vadd.f32 %v660_v7, %v619_v12  ;;  %v667_v33 = vadd.f32 %v661_v8, %v620_v14  ;;  %v798_v52 = vmul.f32 %v792_v17, %v787_v46  ;;  %v400_v8 = vpop.f32.mrf.mxu3 }
 0x188   : > { %v713_v44 = vadd.f32 %v707_v38, %v666_v32  ;;  %v714_v3 = vadd.f32 %v708_v40, %v667_v33  ;;  %v804_v60 = vadd.f32 %v798_v52, %v1473_v62  ;;  %v839_v62 = vld [vmem:[%s1599_s5] sm:$0xff] }
 0x18a   : > { %v769_v9 = vpop.permute.xlu0 %768  ;;  %v724_v10 = vpop.permute.xlu1 %723 }
 0x18b   : > { %v776_v11 = vsel %vm774_vm9, %v1467_v47, %v769_v9  ;;  %v788_v13 = vsel %vm774_vm9, %v769_v9, %v1467_v47  ;;  %v730_v31 = vsel %vm727_vm8, %v724_v10, %v1517_v34  ;;  %v742_v47 = vsel %vm727_vm8, %v1517_v34, %v724_v10  ;;  %v815_v56 = vpop.permute.xlu2 %814 }
 0x18c   : > { %v799_v25 = vmul.f32 %v793_v24, %v776_v11  ;;  %v800_v30 = vmul.f32 %v794_v6, %v788_v13  ;;  %v754_v41 = vmul.f32 %v748_v28, %v730_v31  ;;  %v755_v42 = vmul.f32 %v749_v35, %v742_v47 }
 0x18d   : > { %v775_v34 = vsel %vm774_vm9, %v1515_v23, %v765_v39  ;;  %v828_v4 = vadd.f32 %v815_v56, %v804_v60 }
 0x18e   : > { %v805_v36 = vadd.f32 %v799_v25, %v1509_v15  ;;  %v806_v37 = vadd.f32 %v800_v30, %v1511_v18  ;;  %v760_v48 = vadd.f32 %v754_v41, %v713_v44  ;;  %v761_v49 = vadd.f32 %v755_v42, %v714_v3 }
 0x18f   : > { %v797_v51 = vmul.f32 %v791_v45, %v775_v34  ;;  %v834_v7 = vmax.f32 %v828_v4, 0.0 }
 0x191   : > { %v803_v23 = vadd.f32 %v797_v51, %v1475_v63  ;;  %v371_v63 = vpop.f32.mrf.mxu2 }
 0x192   : > { %v771_v16 = vpop.permute.xlu1 %770  ;;  %v825_v22 = vpop.permute.xlu0 %824 }
 0x193   : > { %v777_v15 = vsel %vm774_vm9, %v771_v16, %v773_v55  ;;  %v789_v18 = vsel %vm774_vm9, %v773_v55, %v771_v16  ;;  %v827_v55 = vadd.f32 %v815_v56, %v803_v23 }
 0x194   : > { %v801_v50 = vmul.f32 %v795_v19, %v777_v15  ;;  %v802_v59 = vmul.f32 %v796_v43, %v789_v18 }
 0x195   : > { %v833_v1 = vmax.f32 %v827_v55, 0.0 }
 0x196   : > { %v807_v53 = vadd.f32 %v801_v50, %v760_v48  ;;  %v808_v54 = vadd.f32 %v802_v59, %v761_v49 }
 0x198   : > { %v831_v57 = vadd.f32 %v825_v22, %v807_v53  ;;  %v832_v58 = vadd.f32 %v825_v22, %v808_v54 }
 0x19a   : > { %v820_v61 = vpop.permute.xlu1 %819  ;;  %v837_v0 = vmax.f32 %v831_v57, 0.0  ;;  %v838_v2 = vmax.f32 %v832_v58, 0.0  ;;  %v321_v9 = vpop.permute.xlu0 %320 }
 0x19b   : > { %v829_v21 = vadd.f32 %v820_v61, %v805_v36  ;;  %v830_v5 = vadd.f32 %v820_v61, %v806_v37  ;;  %v372_v12 = vadd.f32 %v371_v63, %v321_v9  ;;  %v401_v14 = vadd.f32 %v400_v8, %v321_v9 }
 0x19c   : > { %863 = vmatpush.msrb.mxu2 %v837_v0  ;;  %883 = vmatpush.msrb.mxu3 %v838_v2 }
 0x19d   : > { %v835_v24 = vmax.f32 %v829_v21, 0.0  ;;  %v836_v6 = vmax.f32 %v830_v5, 0.0 }
 0x19f   : > { %864 = vmatpush.msrb.mxu2 %v835_v24  ;;  %884 = vmatpush.msrb.mxu3 %v836_v6 }
 0x1a1   : > { %865 = vmatpush.msrb.mxu2 %v833_v1  ;;  %885 = vmatpush.msrb.mxu3 %v834_v7 }
 0x1a2   : > { %1001 = vmatmul.msk.f32.vlgmr.msrb.gmra.mxu2 %vm846_vm10, %v839_v62  ;;  %1002 = vmatmul.msk.f32.vlgmr.msrb.gmra.mxu3 %vm846_vm10, %v839_v62  ;;  %v844_v10 = vpop.permute.xlu1 %843 }
 0x225   : > { %v867_v11 = vpop.f32.mrf.mxu2  ;;  %v887_v13 = vpop.f32.mrf.mxu3 }
 0x226   : > { %v868_v20 = vadd.f32 %v867_v11, %v844_v10  ;;  %v888_v25 = vadd.f32 %v887_v13, %v844_v10 }
 0x228   : > { %v890_v30 = vadd.f32 %v868_v20, %v372_v12  ;;  %v891_v26 = vadd.f32 %v888_v25, %v401_v14 }
 0x22a   : > { %892 = vst [vmem:[%s288_s23] sm:$0xff] %v890_v30 }
 0x22b   : > { %893 = vst [vmem:[%s288_s23 + $0x8] sm:$0xff] %v891_v26 }
 0x22c   : > { %1133 = shalt.err (!%p1130_p8)
}
 0x22d   : > { %1016 = dma.vmem_to_hbm [thread:$0]  (%p1264_p5), %s909_s29, 256, %s911_s8, %s895_s28  }
 0x22e PF: > { %p1028_p9 = scmp.ge.s32.totalorder %s1172_s27, 2  ;;  %s922_s17 = sand.u32 1, %s1160_s24  }
 0x22f   : > { %s923_s20 = scalar_lea.sflag [#allocation4], %s922_s17 }
 0x230   : > { %p1023_p10 = pnand %p1028_p9, %p1268_p6 }
 0x232   : > { %p1024_p11 = pneg %p1023_p10 }
 0x234   : > { %1155 = dma.done.wait (%p1024_p11), %s923_s20, 256  }
 0x235   : > { %1157 = vsyncadd (%p1024_p11), %s923_s20, 4294967040  ;;  %p18_p12 = scmp.ge.s32.totalorder %s1251_s30, 4   ;;  %s1604_s24 = smov %s1164_s25 }
 0x236   : > { %s1605_s25 = smov %s1168_s26  ;;  %s1606_s26 = smov %s1262_s10 }
 0x237   : > { %s1607_s27 = smov %s1251_s30  ;;  %20 = sbr.rel (!%p18_p12) target bundleno = 4 (0x4), region = 96 }
 0x23c   :  { %929 = vsyncpa [#allocation3], 1 }
 0x23d   :  { %931 = vsyncpa [#allocation3 + $0x1], 1 }
 0x23e   :  { %932 = vsyncpa [#allocation4], 1 }
 0x23f   :  { %934 = vsyncpa [#allocation4 + $0x1], 1 }

</bundles_post_ra>
